<compile_context>
chip_gen: v5e
topology: v5e:2x2
jax: 0.10.0
libtpu: 0.0.40
codegen_flags: <defaults>
</compile_context>

<pallas_src>
import jax
import jax.numpy as jnp
from jax.experimental import pallas as pl
from jax.experimental.pallas import tpu as pltpu

_LANES = 128  # lane tile (fixed by hardware)


def _max_block_rows():
    """Default 256 rows (32768 pts/step); 512 on v7x (3.2 TB/s HBM needs
    bigger steps to amortize the fixed ~0.35 us/step overhead)."""
    try:
        kind = jax.devices()[0].device_kind.lower().replace(" ", "")
    except Exception:
        return 256
    if "v7" in kind or "tpu7" in kind:
        return 512
    return 256


def _pick_block_rows(rows8, max_rows):
    """rows8 is the padded sublane-row count (multiple of 8).  Pick the block
    row count: as large as possible up to max_rows, but keep >= 2 grid steps
    whenever there is enough work (megacore / v7x two-TC sharding)."""
    if rows8 <= 8:
        return rows8
    half = ((rows8 // 2) + 7) // 8 * 8
    return min(max_rows, half)


# ----------------------------------------------------------------------------
# Pallas kernel
# ----------------------------------------------------------------------------
def _uv_to_3d_kernel(uv_ref, ga_ref, gb_ref, gc_ref, out_ref):
    # uv_ref:        (2, TR, 128) f32   query-point u, v planes
    # ga/gb/gc_ref:  (6, TR, 128) f32   per-face-vertex data:
    #                  [0:3] unit-sphere embedding of the UV vertex
    #                  [3:6] 3D mesh vertex
    # out_ref:       (3, TR, 128) f32

    # Sphere embedding of the query point (geom_utils.convert_uv_to_3d_...).
    u = uv_ref[0]
    v = uv_ref[1]
    phi = (2.0 * jnp.pi) * (u - 0.5)
    theta = jnp.pi * (v - 0.5)
    ct = jnp.cos(theta)
    px = ct * jnp.cos(phi)
    py = ct * jnp.sin(phi)
    pz = jnp.sin(theta)

    ax, ay, az = ga_ref[0], ga_ref[1], ga_ref[2]
    bx, by, bz = gb_ref[0], gb_ref[1], gb_ref[2]
    cx, cy, cz = gc_ref[0], gc_ref[1], gc_ref[2]

    abx, aby, abz = bx - ax, by - ay, bz - az
    acx, acy, acz = cx - ax, cy - ay, cz - az
    bcx, bcy, bcz = cx - bx, cy - by, cz - bz
    apx, apy, apz = px - ax, py - ay, pz - az
    bpx, bpy, bpz = px - bx, py - by, pz - bz

    def cross_norm(x1, y1, z1, x2, y2, z2):
        crx = y1 * z2 - z1 * y2
        cry = z1 * x2 - x1 * z2
        crz = x1 * y2 - y1 * x2
        return jnp.sqrt(crx * crx + cry * cry + crz * crz)

    area_bap = cross_norm(abx, aby, abz, apx, apy, apz)   # -> weight of C
    area_cap = cross_norm(acx, acy, acz, apx, apy, apz)   # -> weight of B
    area_cbp = cross_norm(bcx, bcy, bcz, bpx, bpy, bpz)   # -> weight of A

    # L1-normalized barycentric weights.  area_BAC cancels in the reference's
    # normalize(p=1), so divide by the (clamped) raw area sum directly.
    s = jnp.maximum(area_bap + area_cap + area_cbp, 1e-12)
    inv_s = pl.reciprocal(s, approx=True)
    inv_s = inv_s * (2.0 - s * inv_s)   # one NR step -> full f32 accuracy

    wa = area_cbp * inv_s   # u  (coefficient of vertex A)
    wb = area_cap * inv_s   # v  (coefficient of vertex B)
    wc = area_bap * inv_s   # w  (coefficient of vertex C)

    for k in range(3):
        out_ref[k] = wa * ga_ref[3 + k] + wb * gb_ref[3 + k] + wc * gc_ref[3 + k]


# ----------------------------------------------------------------------------
# pallas_call wrapper: SoA layout, (channels, rows, 128) planes, TR-row blocks
# ----------------------------------------------------------------------------
def _pallas_bary_interp(uvp, ga, gb, gc, tr):
    """uvp: (2, R, 128) f32.  ga/gb/gc: (6, R, 128) f32, R a multiple of tr.
    Returns (3, R, 128) f32."""
    rows_pad = uvp.shape[1]
    spec_uv = pl.BlockSpec((2, tr, _LANES), lambda i: (0, i, 0))
    spec_g = pl.BlockSpec((6, tr, _LANES), lambda i: (0, i, 0))
    spec_o = pl.BlockSpec((3, tr, _LANES), lambda i: (0, i, 0))

    return pl.pallas_call(
        _uv_to_3d_kernel,
        out_shape=jax.ShapeDtypeStruct((3, rows_pad, _LANES), jnp.float32),
        grid=(rows_pad // tr,),
        in_specs=[spec_uv, spec_g, spec_g, spec_g],
        out_specs=spec_o,
        compiler_params=pltpu.CompilerParams(
            dimension_semantics=("parallel",)),
    )(uvp, ga, gb, gc)


# ----------------------------------------------------------------------------
# Helpers
# ----------------------------------------------------------------------------
def _convert_uv_to_3d(uv):
    """geom_utils.convert_uv_to_3d_coordinates, pure JAX (used on the tiny
    static tables and in the reference)."""
    phi = 2.0 * jnp.pi * (uv[..., 0] - 0.5)
    theta = jnp.pi * (uv[..., 1] - 0.5)
    return jnp.stack([jnp.cos(theta) * jnp.cos(phi),
                      jnp.cos(theta) * jnp.sin(phi),
                      jnp.sin(theta)], axis=-1)


def prepare_mean_shape(mean_shape):
    """One-time per-mesh precompute (sphere embedding + channels-first concat
    table).  Do this once and reuse across forward calls."""
    verts = jnp.asarray(mean_shape["verts"], jnp.float32)       # (V, 3)
    uv_verts = jnp.asarray(mean_shape["uv_verts"], jnp.float32)  # (V, 2)
    sphere = _convert_uv_to_3d(uv_verts)                         # (V, 3)
    table = jnp.concatenate([sphere, verts], axis=1).T           # (6, V)
    H, W = mean_shape["uv_map"].shape[0], mean_shape["uv_map"].shape[1]
    return {
        "table": table,
        "faces": jnp.asarray(mean_shape["faces"], jnp.int32),
        "face_inds": jnp.asarray(mean_shape["face_inds"], jnp.int32),
        "uv_map_hw": (H, W),
    }


# ----------------------------------------------------------------------------
# Wrapper: the full UVTo3D.forward (data-dependent gathers in plain-JAX glue)
# ----------------------------------------------------------------------------
def uv_to_3d_forward(uv, mean_shape_or_prepared, channels_first=False):
    """uv: (N, 2) float32 in [0,1]. Returns points3d: (N, 3) float32
    (or (3, N) when channels_first=True, avoiding the final XLA transpose)."""
    prepared = (mean_shape_or_prepared if "table" in mean_shape_or_prepared
                else prepare_mean_shape(mean_shape_or_prepared))
    H, W = prepared["uv_map_hw"]
    uv = jnp.asarray(uv, jnp.float32)
    n = uv.shape[0]

    # ---- face lookup (cheap, data-dependent) -------------------------------
    uv_map_size = jnp.array([W - 1, H - 1], dtype=uv.dtype).reshape(1, 2)
    # NOTE: torch rounds .5 away from zero, jnp rounds .5 to even; only
    # differs on exact half-integer grid hits (measure zero for random uv).
    uv_inds = jnp.round(uv_map_size * uv).astype(jnp.int32)      # (N, 2)
    face_inds = prepared["face_inds"][uv_inds[:, 1], uv_inds[:, 0]]
    fvi = prepared["faces"][face_inds]                           # (N, 3)

    # ---- tile geometry ------------------------------------------------------
    rows = -(-n // _LANES)
    rows8 = -(-rows // 8) * 8
    tr = _pick_block_rows(rows8, _max_block_rows())
    rows_pad = -(-rows8 // tr) * tr
    n_pad = rows_pad * _LANES
    pad = n_pad - n

    # ---- pad BEFORE the big gathers (pad ~20 B/pt of uv + indices instead of
    # the 72 B/pt of gathered f32 coordinates) --------------------------------
    uv_q = uv
    if pad:
        uv_q = jnp.pad(uv, ((0, pad), (0, 0)))
        fvi = jnp.pad(fvi, ((0, pad), (0, 0)))   # index 0 -> degenerate face,
        #                                          finite zero output, sliced off

    # ---- vertex gathers from the single (6, V) [sphere ; verts] table ------
    table = prepared["table"]                                    # (6, V)
    ga = table[:, fvi[:, 0]].reshape(6, rows_pad, _LANES)
    gb = table[:, fvi[:, 1]].reshape(6, rows_pad, _LANES)
    gc = table[:, fvi[:, 2]].reshape(6, rows_pad, _LANES)
    uvp = uv_q.T.reshape(2, rows_pad, _LANES)

    out = _pallas_bary_interp(uvp, ga, gb, gc, tr)   # (3, rows_pad, 128)
    out = out.reshape(3, n_pad)[:, :n]               # (3, N)
    return out if channels_first else out.T          # (N, 3) module layout


# ----------------------------------------------------------------------------
# Pure-JAX reference (mirrors the PyTorch module) for verification
# ----------------------------------------------------------------------------
def _reference_forward(uv, mean_shape):
    uv_map = mean_shape["uv_map"]
    H, W = uv_map.shape[0], uv_map.shape[1]
    uv_map_size = jnp.array([W - 1, H - 1], dtype=uv.dtype).reshape(1, 2)
    uv_inds = jnp.round(uv_map_size * uv).astype(jnp.int32)
    face_inds = mean_shape["face_inds"][uv_inds[:, 1], uv_inds[:, 0]]
    fvi = mean_shape["faces"][face_inds, :]
    verts = mean_shape["verts"]
    uv_verts = mean_shape["uv_verts"]
    face_verts = jnp.stack([verts[fvi[:, 0]], verts[fvi[:, 1]],
                            verts[fvi[:, 2]]], axis=1)           # (N,3,3)
    face_uv_verts = jnp.stack([uv_verts[fvi[:, 0]], uv_verts[fvi[:, 1]],
                               uv_verts[fvi[:, 2]]], axis=1)     # (N,3,2)
    sv = _convert_uv_to_3d(face_uv_verts)   # (N,3,3)
    sp = _convert_uv_to_3d(uv)              # (N,3)
    A, B, C = sv[:, 0], sv[:, 1], sv[:, 2]
    AB, AC, BC = B - A, C - A, C - B
    AP, BP = sp - A, sp - B
    area_bac = jnp.linalg.norm(jnp.cross(AB, AC), axis=1)
    area_bap = jnp.linalg.norm(jnp.cross(AB, AP), axis=1)
    area_cap = jnp.linalg.norm(jnp.cross(AC, AP), axis=1)
    area_cbp = jnp.linalg.norm(jnp.cross(BC, BP), axis=1)
    w = area_bap / area_bac
    v = area_cap / area_bac
    u = area_cbp / area_bac
    bary = jnp.stack([u, v, w], axis=1)
    bary = bary / jnp.maximum(jnp.sum(jnp.abs(bary), axis=1, keepdims=True),
                              1e-12)
    return jnp.sum(face_verts * bary[:, :, None], axis=1)


# ----------------------------------------------------------------------------
if __name__ == "__main__":
    key = jax.random.PRNGKey(0)
    k_uv, k_v3, k_vuv, k_f, k_fi = jax.random.split(key, 5)

    # Deterministic synthetic mean_shape (shapes per the module's __init__).
    N = 256       # number of query uv points
    V = 64        # mesh vertices
    F = 40        # mesh faces
    H = W = 17    # uv_map grid (only its shape is used by forward)

    # Faces with three distinct vertex indices each (as in any valid mesh) so
    # the reference's division by area_BAC is well-defined.
    base = jax.random.randint(k_f, (F,), 0, V - 2, dtype=jnp.int32)
    faces = jnp.stack([base, base + 1, base + 2], axis=1)

    mean_shape = {
        "uv_map": jnp.zeros((H, W, 3), dtype=jnp.float32),
        "face_inds": jax.random.randint(k_fi, (H, W), 0, F, dtype=jnp.int32),
        "faces": faces,
        "verts": jax.random.normal(k_v3, (V, 3), dtype=jnp.float32),
        "uv_verts": jax.random.uniform(k_vuv, (V, 2), dtype=jnp.float32,
                                       minval=0.05, maxval=0.95),
    }

    uv = jax.random.uniform(k_uv, (N, 2), dtype=jnp.float32,
                            minval=0.01, maxval=0.99)

    prepared = prepare_mean_shape(mean_shape)   # one-time per-mesh precompute
    fwd = jax.jit(lambda q: uv_to_3d_forward(q, prepared))

    points3d = jax.block_until_ready(fwd(uv))
    assert points3d.shape == (N, 3) and points3d.dtype == jnp.float32

    ref = jax.block_until_ready(_reference_forward(uv, mean_shape))
    assert jnp.allclose(points3d, ref, atol=1e-4, rtol=1e-4), (
        float(jnp.max(jnp.abs(points3d - ref))))

    print("KERNEL_OK")
</pallas_src>

<mosaic_0001>
module attributes {stable_mosaic.version = 11 : i64} {
  func.func @_uv_to_3d_kernel(%arg0: i32, %arg1: memref<2x8x128xf32, #tpu.memory_space<vmem>>, %arg2: memref<6x8x128xf32, #tpu.memory_space<vmem>>, %arg3: memref<6x8x128xf32, #tpu.memory_space<vmem>>, %arg4: memref<6x8x128xf32, #tpu.memory_space<vmem>>, %arg5: memref<3x8x128xf32, #tpu.memory_space<vmem>>) attributes {dimension_semantics = [#tpu.dimension_semantics<parallel>], iteration_bounds = array<i64: 1>, scalar_prefetch = 0 : i64, scratch_operands = 0 : i64, tpu.core_type = #tpu.core_type<tc>, window_params = [{transform_indices = @transform_0, window_bounds = array<i64: 2, 8, 128>}, {transform_indices = @transform_1, window_bounds = array<i64: 6, 8, 128>}, {transform_indices = @transform_2, window_bounds = array<i64: 6, 8, 128>}, {transform_indices = @transform_3, window_bounds = array<i64: 6, 8, 128>}, {transform_indices = @transform_4, window_bounds = array<i64: 3, 8, 128>}]} {
    %c0 = arith.constant 0 : index
    %c0_0 = arith.constant 0 : index
    %c0_1 = arith.constant 0 : index
    %0 = vector.load %arg1[%c0, %c0_0, %c0_1] : memref<2x8x128xf32, #tpu.memory_space<vmem>>, vector<1x8x128xf32>
    %1 = vector.shape_cast %0 : vector<1x8x128xf32> to vector<8x128xf32>
    %c1 = arith.constant 1 : index
    %c0_2 = arith.constant 0 : index
    %c0_3 = arith.constant 0 : index
    %2 = vector.load %arg1[%c1, %c0_2, %c0_3] : memref<2x8x128xf32, #tpu.memory_space<vmem>>, vector<1x8x128xf32>
    %3 = vector.shape_cast %2 : vector<1x8x128xf32> to vector<8x128xf32>
    %cst = arith.constant 5.000000e-01 : f32
    %4 = vector.broadcast %cst : f32 to vector<8x128xf32>
    %5 = arith.subf %1, %4 : vector<8x128xf32>
    %cst_4 = arith.constant 6.28318548 : f32
    %6 = vector.broadcast %cst_4 : f32 to vector<8x128xf32>
    %7 = arith.mulf %6, %5 : vector<8x128xf32>
    %cst_5 = arith.constant 5.000000e-01 : f32
    %8 = vector.broadcast %cst_5 : f32 to vector<8x128xf32>
    %9 = arith.subf %3, %8 : vector<8x128xf32>
    %cst_6 = arith.constant 3.14159274 : f32
    %10 = vector.broadcast %cst_6 : f32 to vector<8x128xf32>
    %11 = arith.mulf %10, %9 : vector<8x128xf32>
    %12 = math.cos %11 : vector<8x128xf32>
    %13 = math.cos %7 : vector<8x128xf32>
    %14 = arith.mulf %12, %13 : vector<8x128xf32>
    %15 = math.sin %7 : vector<8x128xf32>
    %16 = arith.mulf %12, %15 : vector<8x128xf32>
    %17 = math.sin %11 : vector<8x128xf32>
    %c0_7 = arith.constant 0 : index
    %c0_8 = arith.constant 0 : index
    %c0_9 = arith.constant 0 : index
    %18 = vector.load %arg2[%c0_7, %c0_8, %c0_9] : memref<6x8x128xf32, #tpu.memory_space<vmem>>, vector<1x8x128xf32>
    %19 = vector.shape_cast %18 : vector<1x8x128xf32> to vector<8x128xf32>
    %c1_10 = arith.constant 1 : index
    %c0_11 = arith.constant 0 : index
    %c0_12 = arith.constant 0 : index
    %20 = vector.load %arg2[%c1_10, %c0_11, %c0_12] : memref<6x8x128xf32, #tpu.memory_space<vmem>>, vector<1x8x128xf32>
    %21 = vector.shape_cast %20 : vector<1x8x128xf32> to vector<8x128xf32>
    %c2 = arith.constant 2 : index
    %c0_13 = arith.constant 0 : index
    %c0_14 = arith.constant 0 : index
    %22 = vector.load %arg2[%c2, %c0_13, %c0_14] : memref<6x8x128xf32, #tpu.memory_space<vmem>>, vector<1x8x128xf32>
    %23 = vector.shape_cast %22 : vector<1x8x128xf32> to vector<8x128xf32>
    %c0_15 = arith.constant 0 : index
    %c0_16 = arith.constant 0 : index
    %c0_17 = arith.constant 0 : index
    %24 = vector.load %arg3[%c0_15, %c0_16, %c0_17] : memref<6x8x128xf32, #tpu.memory_space<vmem>>, vector<1x8x128xf32>
    %25 = vector.shape_cast %24 : vector<1x8x128xf32> to vector<8x128xf32>
    %c1_18 = arith.constant 1 : index
    %c0_19 = arith.constant 0 : index
    %c0_20 = arith.constant 0 : index
    %26 = vector.load %arg3[%c1_18, %c0_19, %c0_20] : memref<6x8x128xf32, #tpu.memory_space<vmem>>, vector<1x8x128xf32>
    %27 = vector.shape_cast %26 : vector<1x8x128xf32> to vector<8x128xf32>
    %c2_21 = arith.constant 2 : index
    %c0_22 = arith.constant 0 : index
    %c0_23 = arith.constant 0 : index
    %28 = vector.load %arg3[%c2_21, %c0_22, %c0_23] : memref<6x8x128xf32, #tpu.memory_space<vmem>>, vector<1x8x128xf32>
    %29 = vector.shape_cast %28 : vector<1x8x128xf32> to vector<8x128xf32>
    %c0_24 = arith.constant 0 : index
    %c0_25 = arith.constant 0 : index
    %c0_26 = arith.constant 0 : index
    %30 = vector.load %arg4[%c0_24, %c0_25, %c0_26] : memref<6x8x128xf32, #tpu.memory_space<vmem>>, vector<1x8x128xf32>
    %31 = vector.shape_cast %30 : vector<1x8x128xf32> to vector<8x128xf32>
    %c1_27 = arith.constant 1 : index
    %c0_28 = arith.constant 0 : index
    %c0_29 = arith.constant 0 : index
    %32 = vector.load %arg4[%c1_27, %c0_28, %c0_29] : memref<6x8x128xf32, #tpu.memory_space<vmem>>, vector<1x8x128xf32>
    %33 = vector.shape_cast %32 : vector<1x8x128xf32> to vector<8x128xf32>
    %c2_30 = arith.constant 2 : index
    %c0_31 = arith.constant 0 : index
    %c0_32 = arith.constant 0 : index
    %34 = vector.load %arg4[%c2_30, %c0_31, %c0_32] : memref<6x8x128xf32, #tpu.memory_space<vmem>>, vector<1x8x128xf32>
    %35 = vector.shape_cast %34 : vector<1x8x128xf32> to vector<8x128xf32>
    %36 = arith.subf %25, %19 : vector<8x128xf32>
    %37 = arith.subf %27, %21 : vector<8x128xf32>
    %38 = arith.subf %29, %23 : vector<8x128xf32>
    %39 = arith.subf %31, %19 : vector<8x128xf32>
    %40 = arith.subf %33, %21 : vector<8x128xf32>
    %41 = arith.subf %35, %23 : vector<8x128xf32>
    %42 = arith.subf %31, %25 : vector<8x128xf32>
    %43 = arith.subf %33, %27 : vector<8x128xf32>
    %44 = arith.subf %35, %29 : vector<8x128xf32>
    %45 = arith.subf %14, %19 : vector<8x128xf32>
    %46 = arith.subf %16, %21 : vector<8x128xf32>
    %47 = arith.subf %17, %23 : vector<8x128xf32>
    %48 = arith.subf %14, %25 : vector<8x128xf32>
    %49 = arith.subf %16, %27 : vector<8x128xf32>
    %50 = arith.subf %17, %29 : vector<8x128xf32>
    %51 = arith.mulf %37, %47 : vector<8x128xf32>
    %52 = arith.mulf %38, %46 : vector<8x128xf32>
    %53 = arith.subf %51, %52 : vector<8x128xf32>
    %54 = arith.mulf %38, %45 : vector<8x128xf32>
    %55 = arith.mulf %36, %47 : vector<8x128xf32>
    %56 = arith.subf %54, %55 : vector<8x128xf32>
    %57 = arith.mulf %36, %46 : vector<8x128xf32>
    %58 = arith.mulf %37, %45 : vector<8x128xf32>
    %59 = arith.subf %57, %58 : vector<8x128xf32>
    %60 = arith.mulf %53, %53 : vector<8x128xf32>
    %61 = arith.mulf %56, %56 : vector<8x128xf32>
    %62 = arith.addf %60, %61 : vector<8x128xf32>
    %63 = arith.mulf %59, %59 : vector<8x128xf32>
    %64 = arith.addf %62, %63 : vector<8x128xf32>
    %65 = math.sqrt %64 : vector<8x128xf32>
    %66 = arith.mulf %40, %47 : vector<8x128xf32>
    %67 = arith.mulf %41, %46 : vector<8x128xf32>
    %68 = arith.subf %66, %67 : vector<8x128xf32>
    %69 = arith.mulf %41, %45 : vector<8x128xf32>
    %70 = arith.mulf %39, %47 : vector<8x128xf32>
    %71 = arith.subf %69, %70 : vector<8x128xf32>
    %72 = arith.mulf %39, %46 : vector<8x128xf32>
    %73 = arith.mulf %40, %45 : vector<8x128xf32>
    %74 = arith.subf %72, %73 : vector<8x128xf32>
    %75 = arith.mulf %68, %68 : vector<8x128xf32>
    %76 = arith.mulf %71, %71 : vector<8x128xf32>
    %77 = arith.addf %75, %76 : vector<8x128xf32>
    %78 = arith.mulf %74, %74 : vector<8x128xf32>
    %79 = arith.addf %77, %78 : vector<8x128xf32>
    %80 = math.sqrt %79 : vector<8x128xf32>
    %81 = arith.mulf %43, %50 : vector<8x128xf32>
    %82 = arith.mulf %44, %49 : vector<8x128xf32>
    %83 = arith.subf %81, %82 : vector<8x128xf32>
    %84 = arith.mulf %44, %48 : vector<8x128xf32>
    %85 = arith.mulf %42, %50 : vector<8x128xf32>
    %86 = arith.subf %84, %85 : vector<8x128xf32>
    %87 = arith.mulf %42, %49 : vector<8x128xf32>
    %88 = arith.mulf %43, %48 : vector<8x128xf32>
    %89 = arith.subf %87, %88 : vector<8x128xf32>
    %90 = arith.mulf %83, %83 : vector<8x128xf32>
    %91 = arith.mulf %86, %86 : vector<8x128xf32>
    %92 = arith.addf %90, %91 : vector<8x128xf32>
    %93 = arith.mulf %89, %89 : vector<8x128xf32>
    %94 = arith.addf %92, %93 : vector<8x128xf32>
    %95 = math.sqrt %94 : vector<8x128xf32>
    %96 = arith.addf %65, %80 : vector<8x128xf32>
    %97 = arith.addf %96, %95 : vector<8x128xf32>
    %cst_33 = arith.constant 9.99999996E-13 : f32
    %98 = vector.broadcast %cst_33 : f32 to vector<8x128xf32>
    %99 = arith.maximumf %97, %98 : vector<8x128xf32>
    %100 = tpu.reciprocal %99 {approx = true} : vector<8x128xf32> -> vector<8x128xf32>
    %101 = arith.mulf %99, %100 : vector<8x128xf32>
    %cst_34 = arith.constant 2.000000e+00 : f32
    %102 = vector.broadcast %cst_34 : f32 to vector<8x128xf32>
    %103 = arith.subf %102, %101 : vector<8x128xf32>
    %104 = arith.mulf %100, %103 : vector<8x128xf32>
    %105 = arith.mulf %95, %104 : vector<8x128xf32>
    %106 = arith.mulf %80, %104 : vector<8x128xf32>
    %107 = arith.mulf %65, %104 : vector<8x128xf32>
    %c3 = arith.constant 3 : index
    %c0_35 = arith.constant 0 : index
    %c0_36 = arith.constant 0 : index
    %108 = vector.load %arg2[%c3, %c0_35, %c0_36] : memref<6x8x128xf32, #tpu.memory_space<vmem>>, vector<1x8x128xf32>
    %109 = vector.shape_cast %108 : vector<1x8x128xf32> to vector<8x128xf32>
    %110 = arith.mulf %105, %109 : vector<8x128xf32>
    %c3_37 = arith.constant 3 : index
    %c0_38 = arith.constant 0 : index
    %c0_39 = arith.constant 0 : index
    %111 = vector.load %arg3[%c3_37, %c0_38, %c0_39] : memref<6x8x128xf32, #tpu.memory_space<vmem>>, vector<1x8x128xf32>
    %112 = vector.shape_cast %111 : vector<1x8x128xf32> to vector<8x128xf32>
    %113 = arith.mulf %106, %112 : vector<8x128xf32>
    %114 = arith.addf %110, %113 : vector<8x128xf32>
    %c3_40 = arith.constant 3 : index
    %c0_41 = arith.constant 0 : index
    %c0_42 = arith.constant 0 : index
    %115 = vector.load %arg4[%c3_40, %c0_41, %c0_42] : memref<6x8x128xf32, #tpu.memory_space<vmem>>, vector<1x8x128xf32>
    %116 = vector.shape_cast %115 : vector<1x8x128xf32> to vector<8x128xf32>
    %117 = arith.mulf %107, %116 : vector<8x128xf32>
    %118 = arith.addf %114, %117 : vector<8x128xf32>
    %c0_43 = arith.constant 0 : index
    %c0_44 = arith.constant 0 : index
    %c0_45 = arith.constant 0 : index
    %119 = vector.load %arg5[%c0_43, %c0_44, %c0_45] : memref<3x8x128xf32, #tpu.memory_space<vmem>>, vector<1x8x128xf32>
    %120 = vector.shape_cast %119 : vector<1x8x128xf32> to vector<8x128xf32>
    %121 = vector.shape_cast %118 : vector<8x128xf32> to vector<1x8x128xf32>
    tpu.vector_store %arg5[%c0_43, %c0_44, %c0_45], %121 {strides = array<i32>} : memref<3x8x128xf32, #tpu.memory_space<vmem>>, vector<1x8x128xf32>,
    %c4 = arith.constant 4 : index
    %c0_46 = arith.constant 0 : index
    %c0_47 = arith.constant 0 : index
    %122 = vector.load %arg2[%c4, %c0_46, %c0_47] : memref<6x8x128xf32, #tpu.memory_space<vmem>>, vector<1x8x128xf32>
    %123 = vector.shape_cast %122 : vector<1x8x128xf32> to vector<8x128xf32>
    %124 = arith.mulf %105, %123 : vector<8x128xf32>
    %c4_48 = arith.constant 4 : index
    %c0_49 = arith.constant 0 : index
    %c0_50 = arith.constant 0 : index
    %125 = vector.load %arg3[%c4_48, %c0_49, %c0_50] : memref<6x8x128xf32, #tpu.memory_space<vmem>>, vector<1x8x128xf32>
    %126 = vector.shape_cast %125 : vector<1x8x128xf32> to vector<8x128xf32>
    %127 = arith.mulf %106, %126 : vector<8x128xf32>
    %128 = arith.addf %124, %127 : vector<8x128xf32>
    %c4_51 = arith.constant 4 : index
    %c0_52 = arith.constant 0 : index
    %c0_53 = arith.constant 0 : index
    %129 = vector.load %arg4[%c4_51, %c0_52, %c0_53] : memref<6x8x128xf32, #tpu.memory_space<vmem>>, vector<1x8x128xf32>
    %130 = vector.shape_cast %129 : vector<1x8x128xf32> to vector<8x128xf32>
    %131 = arith.mulf %107, %130 : vector<8x128xf32>
    %132 = arith.addf %128, %131 : vector<8x128xf32>
    %c1_54 = arith.constant 1 : index
    %c0_55 = arith.constant 0 : index
    %c0_56 = arith.constant 0 : index
    %133 = vector.load %arg5[%c1_54, %c0_55, %c0_56] : memref<3x8x128xf32, #tpu.memory_space<vmem>>, vector<1x8x128xf32>
    %134 = vector.shape_cast %133 : vector<1x8x128xf32> to vector<8x128xf32>
    %135 = vector.shape_cast %132 : vector<8x128xf32> to vector<1x8x128xf32>
    tpu.vector_store %arg5[%c1_54, %c0_55, %c0_56], %135 {strides = array<i32>} : memref<3x8x128xf32, #tpu.memory_space<vmem>>, vector<1x8x128xf32>,
    %c5 = arith.constant 5 : index
    %c0_57 = arith.constant 0 : index
    %c0_58 = arith.constant 0 : index
    %136 = vector.load %arg2[%c5, %c0_57, %c0_58] : memref<6x8x128xf32, #tpu.memory_space<vmem>>, vector<1x8x128xf32>
    %137 = vector.shape_cast %136 : vector<1x8x128xf32> to vector<8x128xf32>
    %138 = arith.mulf %105, %137 : vector<8x128xf32>
    %c5_59 = arith.constant 5 : index
    %c0_60 = arith.constant 0 : index
    %c0_61 = arith.constant 0 : index
    %139 = vector.load %arg3[%c5_59, %c0_60, %c0_61] : memref<6x8x128xf32, #tpu.memory_space<vmem>>, vector<1x8x128xf32>
    %140 = vector.shape_cast %139 : vector<1x8x128xf32> to vector<8x128xf32>
    %141 = arith.mulf %106, %140 : vector<8x128xf32>
    %142 = arith.addf %138, %141 : vector<8x128xf32>
    %c5_62 = arith.constant 5 : index
    %c0_63 = arith.constant 0 : index
    %c0_64 = arith.constant 0 : index
    %143 = vector.load %arg4[%c5_62, %c0_63, %c0_64] : memref<6x8x128xf32, #tpu.memory_space<vmem>>, vector<1x8x128xf32>
    %144 = vector.shape_cast %143 : vector<1x8x128xf32> to vector<8x128xf32>
    %145 = arith.mulf %107, %144 : vector<8x128xf32>
    %146 = arith.addf %142, %145 : vector<8x128xf32>
    %c2_65 = arith.constant 2 : index
    %c0_66 = arith.constant 0 : index
    %c0_67 = arith.constant 0 : index
    %147 = vector.load %arg5[%c2_65, %c0_66, %c0_67] : memref<3x8x128xf32, #tpu.memory_space<vmem>>, vector<1x8x128xf32>
    %148 = vector.shape_cast %147 : vector<1x8x128xf32> to vector<8x128xf32>
    %149 = vector.shape_cast %146 : vector<8x128xf32> to vector<1x8x128xf32>
    tpu.vector_store %arg5[%c2_65, %c0_66, %c0_67], %149 {strides = array<i32>} : memref<3x8x128xf32, #tpu.memory_space<vmem>>, vector<1x8x128xf32>,
    return
  }
  func.func @transform_0(%arg0: i32) -> (i32, i32, i32) {
    %c0_i32 = arith.constant 0 : i32
    %c0_i32_0 = arith.constant 0 : i32
    %c0_i32_1 = arith.constant 0 : i32
    return %c0_i32, %arg0, %c0_i32_0 : i32, i32, i32
  }
  func.func @transform_1(%arg0: i32) -> (i32, i32, i32) {
    %c0_i32 = arith.constant 0 : i32
    %c0_i32_0 = arith.constant 0 : i32
    %c0_i32_1 = arith.constant 0 : i32
    return %c0_i32, %arg0, %c0_i32_0 : i32, i32, i32
  }
  func.func @transform_2(%arg0: i32) -> (i32, i32, i32) {
    %c0_i32 = arith.constant 0 : i32
    %c0_i32_0 = arith.constant 0 : i32
    %c0_i32_1 = arith.constant 0 : i32
    return %c0_i32, %arg0, %c0_i32_0 : i32, i32, i32
  }
  func.func @transform_3(%arg0: i32) -> (i32, i32, i32) {
    %c0_i32 = arith.constant 0 : i32
    %c0_i32_0 = arith.constant 0 : i32
    %c0_i32_1 = arith.constant 0 : i32
    return %c0_i32, %arg0, %c0_i32_0 : i32, i32, i32
  }
  func.func @transform_4(%arg0: i32) -> (i32, i32, i32) {
    %c0_i32 = arith.constant 0 : i32
    %c0_i32_0 = arith.constant 0 : i32
    %c0_i32_1 = arith.constant 0 : i32
    return %c0_i32, %arg0, %c0_i32_0 : i32, i32, i32
  }
}

</mosaic_0001>

<bundles_post_ra>
// kernel: _lambda_.1
= control target key start
LH: loop header
LB: loop body
LE: loop exit
PB: predicated region body
PF: predicated region fallthrough
CT: control target
= control target key end

     0   :  { %v851_v27 = vmov 683565275   ;;  %v852_v29 = vmov 2475754826   ;;  %v853_v31 = vmov 2131351028   ;;  %s1125_s0 = inlined_call_operand.vmem [shape: f32[2,8,128], index: 0, kind: input, shape index: {}]   ;;  %s1126_s1 = inlined_call_operand.vmem [shape: f32[6,8,128], index: 1, kind: input, shape index: {}]   ;;  %s1127_s2 = inlined_call_operand.vmem [shape: f32[6,8,128], index: 2, kind: input, shape index: {}]   ;;  %s1128_s3 = inlined_call_operand.vmem [shape: f32[6,8,128], index: 3, kind: input, shape index: {}]   ;;  %s1129_s4 = inlined_call_operand.vmem [shape: f32[3,8,128], index: 4, kind: output, shape index: {}]  }
   0x1   :  { %v17_v0 = vld [vmem:[%s1125_s0] sm:$0xff]  ;;  %v804_v1 = vld [vmem:[%s1125_s0 + $0x8] sm:$0xff]  ;;  %v854_v33 = vmov 2102212464   ;;  %v855_v35 = vmov 920167782  }
   0x2   :  { %v805_v2 = vadd.f32 -0.5, %v17_v0  ;;  %v806_v3 = vadd.f32 -0.5, %v804_v1  ;;  %v856_v44 = vmov 1326507024  }
   0x4   :  { %v889_v4 = vmul.f32 6.2831855, %v805_v2  ;;  %v891_v5 = vmul.f32 3.1415927, %v806_v3 }
   0x6   :  { %v24_v6 = vand.u32 2147483647, %v891_v5  ;;  %v27_v7 = vand.u32 2139095040, %v891_v5  ;;  %v178_v8 = vand.u32 2147483647, %v889_v4  ;;  %v181_v9 = vand.u32 2139095040, %v889_v4 }
   0x8   :  { %v28_v10 = vshrl.u32 %v27_v7, 23  ;;  %v31_v11 = vand.u32 8388607, %v24_v6  ;;  %v182_v12 = vshrl.u32 %v181_v9, 23  ;;  %v185_v16 = vand.u32 8388607, %v178_v8 }
   0xa   :  { %v807_v13 = vadd.s32 4294967169, %v28_v10  ;;  %v32_v14 = vor.u32 8388608, %v31_v11  ;;  %v810_v15 = vadd.s32 4294967169, %v182_v12  ;;  %v186_v21 = vor.u32 8388608, %v185_v16 }
   0xc   :  { %v34_v17 = vadd.s32 1, %v807_v13  ;;  %v188_v18 = vadd.s32 1, %v810_v15  ;;  %v901_v20 = vshll.u32 %v32_v14, 8  ;;  %v911_v38 = vshll.u32 %v186_v21, 8 }
   0xe   :  { %vm35_vm0 = vcmp.gt.s32.totalorder %v34_v17, 0  ;;  %vm189_vm1 = vcmp.gt.s32.totalorder %v188_v18, 0  ;;  %v73_v37 = vand.u32 65535, %v901_v20  ;;  %v74_v42 = vshrl.u32 %v901_v20, 16 }
   0xf   :  { %v36_v19 = vsel %vm35_vm0, %v34_v17, 0  ;;  %v190_v23 = vsel %vm189_vm1, %v188_v18, 0 }
  0x10   :  { %v38_v22 = vand.u32 31, %v36_v19  ;;  %v903_v24 = vshrl.u32 %v36_v19, 5  ;;  %v905_v25 = vand.u32 31, %v190_v23  ;;  %v929_v55 = vshrl.u32 %v190_v23, 5 }
  0x12   :  { %v39_v26 = vsub.s32 32, %v38_v22  ;;  %v41_v28 = vshll.u32 %v851_v27, %v38_v22  ;;  %v44_v30 = vshll.u32 %v852_v29, %v38_v22  ;;  %v47_v32 = vshll.u32 %v853_v31, %v38_v22 }
  0x13   :  { %v50_v34 = vshll.u32 %v854_v33, %v38_v22  ;;  %v53_v36 = vshll.u32 %v855_v35, %v38_v22  ;;  %vm56_vm2 = vcmp.lt.s32.totalorder %v903_v24, 1  ;;  %vm59_vm3 = vcmp.lt.s32.totalorder %v903_v24, 4 }
  0x14   :  { %v42_v39 = vshrl.u32 %v852_v29, %v39_v26  ;;  %v45_v40 = vshrl.u32 %v853_v31, %v39_v26  ;;  %v48_v41 = vshrl.u32 %v854_v33, %v39_v26  ;;  %v51_v43 = vshrl.u32 %v855_v35, %v39_v26 }
  0x15   :  { %v54_v45 = vshrl.u32 %v856_v44, %v39_v26  ;;  %v920_v49 = vsub.s32 32, %v905_v25  ;;  %v40_v50 = vshrl.u32 %v851_v27, %v39_v26  ;;  %vm58_vm4 = vcmp.lt.s32.totalorder %v903_v24, 3 }
  0x16   :  { %v43_v46 = vor.u32 %v42_v39, %v41_v28  ;;  %v46_v47 = vor.u32 %v45_v40, %v44_v30  ;;  %v49_v48 = vor.u32 %v48_v41, %v47_v32  ;;  %v52_v51 = vor.u32 %v51_v43, %v50_v34 }
  0x17   :  { %v55_v52 = vor.u32 %v54_v45, %v53_v36  ;;  %vm57_vm5 = vcmp.lt.s32.totalorder %v903_v24, 2  ;;  %v195_v58 = vshll.u32 %v851_v27, %v905_v25  ;;  %v198_v59 = vshll.u32 %v852_v29, %v905_v25 }
  0x18   :  { %v64_v53 = vsel %vm56_vm2, %v43_v46, %v46_v47  ;;  %v68_v54 = vsel %vm56_vm2, %v46_v47, %v49_v48  ;;  %v65_v56 = vsel %vm59_vm3, %v52_v51, 920167782  ;;  %v61_v60 = vsel %vm59_vm3, %v49_v48, 2102212464 }
  0x19   :  { %v69_v57 = vsel %vm59_vm3, %v55_v52, 1326507024  ;;  %v66_v61 = vsel %vm58_vm4, %v49_v48, %v65_v56  ;;  %v196_v63 = vshrl.u32 %v852_v29, %v920_v49  ;;  %v60_v0 = vsel %vm56_vm2, %v40_v50, %v43_v46 }
  0x1a   :  { %v70_v62 = vsel %vm58_vm4, %v52_v51, %v69_v57  ;;  %v67_v1 = vsel %vm57_vm5, %v64_v53, %v66_v61  ;;  %v199_v3 = vshrl.u32 %v853_v31, %v920_v49  ;;  %v62_v12 = vsel %vm58_vm4, %v46_v47, %v61_v60 }
  0x1b   :  { %v71_v2 = vsel %vm57_vm5, %v68_v54, %v70_v62  ;;  %v97_v10 = vand.u32 65535, %v67_v1  ;;  %v98_v11 = vshrl.u32 %v67_v1, 16  ;;  %v954_v13 = vor.u32 %v196_v63, %v195_v58 }
  0x1c   :  { %v75_v7 = vand.u32 65535, %v71_v2  ;;  %v76_v9 = vshrl.u32 %v71_v2, 16  ;;  %v956_v14 = vor.u32 %v199_v3, %v198_v59  ;;  %v201_v15 = vshll.u32 %v853_v31, %v905_v25 }
  0x1d   :  { %v202_v19 = vshrl.u32 %v854_v33, %v920_v49  ;;  %v99_v22 = vmul.u32 %v97_v10, %v73_v37  ;;  %v100_v23 = vmul.u32 %v98_v11, %v73_v37  ;;  %v101_v26 = vmul.u32 %v97_v10, %v74_v42 }
  0x1e   :  { %v77_v16 = vmul.u32 %v75_v7, %v73_v37  ;;  %v78_v17 = vmul.u32 %v76_v9, %v73_v37  ;;  %v79_v18 = vmul.u32 %v75_v7, %v74_v42  ;;  %v80_v21 = vmul.u32 %v76_v9, %v74_v42 }
  0x1f   :  { %v102_v32 = vmul.u32 %v98_v11, %v74_v42  ;;  %v103_v36 = vshll.u32 %v100_v23, 16  ;;  %v104_v39 = vshrl.u32 %v100_v23, 16  ;;  %v105_v40 = vshll.u32 %v101_v26, 16 }
  0x20   :  { %v81_v28 = vshll.u32 %v78_v17, 16  ;;  %v82_v29 = vshrl.u32 %v78_v17, 16  ;;  %v83_v30 = vshll.u32 %v79_v18, 16  ;;  %v84_v34 = vshrl.u32 %v79_v18, 16 }
  0x21   :  { %v106_v41 = vshrl.u32 %v101_v26, 16  ;;  %v204_v43 = vshll.u32 %v854_v33, %v905_v25  ;;  %v857_v45 = vmov 0   ;;  %vm107_vm7 = vc.u32 %v99_v22, %v103_v36 }
  0x22   :  { %vm85_vm6 = vc.u32 %v77_v16, %v81_v28  ;;  %v87_v31 = vadd.s32 %v81_v28, %v77_v16  ;;  %v109_v37 = vadd.s32 %v103_v36, %v99_v22  ;;  %v205_v47 = vshrl.u32 %v855_v35, %v920_v49 }
  0x23   :  { %v86_v46 = vsel %vm85_vm6, 1, %v857_v45  ;;  %v108_v42 = vsel %vm107_vm7, 1, %v857_v45  ;;  %v207_v50 = vshll.u32 %v855_v35, %v905_v25  ;;  %v203_v33 = vor.u32 %v202_v19, %v201_v15 }
  0x24   :  { %v88_v48 = vadd.s32 %v86_v46, %v80_v21  ;;  %vm89_vm8 = vc.u32 %v87_v31, %v83_v30  ;;  %v110_v52 = vadd.s32 %v108_v42, %v102_v32  ;;  %vm111_vm9 = vc.u32 %v109_v37, %v105_v40 }
  0x25   :  { %v90_v51 = vsel %vm89_vm8, 1, %v857_v45  ;;  %v112_v54 = vsel %vm111_vm9, 1, %v857_v45  ;;  %v206_v56 = vor.u32 %v205_v47, %v204_v43  ;;  %v208_v57 = vshrl.u32 %v856_v44, %v920_v49 }
  0x26   :  { %v92_v53 = vadd.s32 %v90_v51, %v88_v48  ;;  %v973_v58 = vadd.s32 %v109_v37, %v105_v40  ;;  %v114_v59 = vadd.s32 %v112_v54, %v110_v52  ;;  %vm210_vm10 = vcmp.lt.s32.totalorder %v929_v55, 1 }
  0x27   :  { %vm212_vm11 = vcmp.lt.s32.totalorder %v929_v55, 3  ;;  %v209_v35 = vor.u32 %v208_v57, %v207_v50  ;;  %vm211_vm12 = vcmp.lt.s32.totalorder %v929_v55, 2  ;;  %vm213_vm13 = vcmp.lt.s32.totalorder %v929_v55, 4 }
  0x28   :  { %v93_v25 = vadd.s32 %v92_v53, %v82_v29  ;;  %v63_v60 = vsel %vm57_vm5, %v60_v0, %v62_v12  ;;  %v115_v61 = vadd.s32 %v114_v59, %v104_v39  ;;  %v218_v44 = vsel %vm210_vm10, %v954_v13, %v956_v14 }
  0x29   :  { %v219_v62 = vsel %vm213_vm13, %v206_v56, 920167782  ;;  %v222_v2 = vsel %vm210_vm10, %v956_v14, %v203_v33  ;;  %v227_v24 = vand.u32 65535, %v911_v38  ;;  %v223_v7 = vsel %vm213_vm13, %v209_v35, 1326507024 }
  0x2a   :  { %v987_v63 = vadd.s32 %v93_v25, %v84_v34  ;;  %v220_v1 = vsel %vm212_vm11, %v203_v33, %v219_v62  ;;  %v116_v0 = vadd.s32 %v115_v61, %v106_v41  ;;  %v228_v9 = vshrl.u32 %v911_v38, 16 }
  0x2b   :  { %v221_v3 = vsel %vm211_vm12, %v218_v44, %v220_v1  ;;  %v117_v10 = vmul.u32 %v901_v20, %v63_v60  ;;  %v224_v11 = vsel %vm212_vm11, %v206_v56, %v223_v7  ;;  %v194_v22 = vshrl.u32 %v851_v27, %v920_v49 }
  0x2c   :  { %vm119_vm14 = vc.u32 %v987_v63, %v973_v58  ;;  %v251_v12 = vand.u32 65535, %v221_v3  ;;  %v120_v15 = vadd.s32 1, %v116_v0  ;;  %v225_v16 = vsel %vm211_vm12, %v222_v2, %v224_v11 }
  0x2d   :  { %v252_v17 = vshrl.u32 %v221_v3, 16  ;;  %v229_v18 = vand.u32 65535, %v225_v16  ;;  %v230_v19 = vshrl.u32 %v225_v16, 16  ;;  %v215_v39 = vsel %vm213_vm13, %v203_v33, 2102212464 }
  0x2e   :  { %v121_v21 = vsel %vm119_vm14, %v120_v15, %v116_v0  ;;  %v255_v20 = vmul.u32 %v251_v12, %v228_v9  ;;  %v253_v30 = vmul.u32 %v251_v12, %v227_v24  ;;  %v214_v41 = vsel %vm210_vm10, %v194_v22, %v954_v13 }
  0x2f   :  { %v254_v23 = vmul.u32 %v252_v17, %v227_v24  ;;  %v122_v26 = vadd.s32 %v121_v21, %v117_v10  ;;  %v231_v28 = vmul.u32 %v229_v18, %v227_v24  ;;  %v232_v29 = vmul.u32 %v230_v19, %v227_v24 }
  0x30   :  { %v233_v32 = vmul.u32 %v229_v18, %v228_v9  ;;  %v234_v40 = vmul.u32 %v230_v19, %v228_v9  ;;  %v256_v27 = vmul.u32 %v252_v17, %v228_v9  ;;  %v259_v49 = vshll.u32 %v255_v20, 16 }
  0x31   :  { %v257_v34 = vshll.u32 %v254_v23, 16  ;;  %v123_v36 = vadd.s32 536870912, %v122_v26  ;;  %v235_v31 = vshll.u32 %v232_v29, 16  ;;  %v216_v47 = vsel %vm212_vm11, %v956_v14, %v215_v39 }
  0x32   :  { %v237_v43 = vshll.u32 %v233_v32, 16  ;;  %v236_v13 = vshrl.u32 %v232_v29, 16  ;;  %v258_v53 = vshrl.u32 %v254_v23, 16  ;;  %v238_v57 = vshrl.u32 %v233_v32, 16 }
  0x33   :  { %v1014_v46 = vshrl.u32 %v123_v36, 30  ;;  %vm239_vm15 = vc.u32 %v231_v28, %v235_v31  ;;  %v241_v37 = vadd.s32 %v235_v31, %v231_v28  ;;  %vm261_vm0 = vc.u32 %v253_v30, %v257_v34 }
  0x34   :  { %v240_v48 = vsel %vm239_vm15, 1, %v857_v45  ;;  %v262_v42 = vsel %vm261_vm0, 1, %v857_v45  ;;  %v263_v50 = vadd.s32 %v257_v34, %v253_v30  ;;  %v260_v25 = vshrl.u32 %v255_v20, 16 }
  0x35   :  { %v125_v51 = vshll.u32 %v1014_v46, 30  ;;  %v242_v52 = vadd.s32 %v240_v48, %v234_v40  ;;  %vm243_vm1 = vc.u32 %v241_v37, %v237_v43  ;;  %v264_v54 = vadd.s32 %v262_v42, %v256_v27 }
  0x36   :  { %v244_v33 = vsel %vm243_vm1, 1, %v857_v45  ;;  %vm265_vm2 = vc.u32 %v263_v50, %v259_v49  ;;  %v267_v44 = vadd.s32 %v263_v50, %v259_v49  ;;  %v217_v62 = vsel %vm211_vm12, %v214_v41, %v216_v47 }
  0x37   :  { %v126_v56 = vsub.s32 %v122_v26, %v125_v51  ;;  %v246_v59 = vadd.s32 %v244_v33, %v242_v52  ;;  %v266_v14 = vsel %vm265_vm2, 1, %v857_v45  ;;  %v271_v7 = vmul.u32 %v911_v38, %v217_v62 }
  0x38   :  { %v268_v35 = vadd.s32 %v266_v14, %v264_v54  ;;  %v118_v45 = vadd.s32 %v973_v58, %v987_v63  ;;  %vm26_vm7 = vcmp.lt.s32.totalorder %v891_v5, 0  ;;  %vm1032_vm8 = vcmp.le.f32.partialorder %v24_v6, 0.7853982 }
  0x39   :  { %vm127_vm3 = vcmp.lt.s32.totalorder %v126_v56, 0  ;;  %v128_v60 = vsub.s32 0, %v126_v56  ;;  %v247_v61 = vadd.s32 %v246_v59, %v236_v13  ;;  %v148_v54 = vsub.s32 4, %v1014_v46 }
  0x3a   :  { %v269_v1 = vadd.s32 %v268_v35, %v258_v53  ;;  %vm180_vm10 = vcmp.lt.s32.totalorder %v889_v4, 0  ;;  %vm179_vm11 = vcmp.le.f32.partialorder %v178_v8, 0.7853982 }
  0x3b   :  { %v129_v2 = vsel %vm127_vm3, %v128_v60, %v126_v56  ;;  %v248_v24 = vadd.s32 %v247_v61, %v238_v57  ;;  %v149_v35 = vsel %vm26_vm7, %v148_v54, %v1014_v46 }
  0x3c   :  { %v130_v0 = vclz %v129_v2  ;;  %v270_v3 = vadd.s32 %v269_v1, %v260_v25 }
  0x3d   :  { %vm273_vm4 = vc.u32 %v248_v24, %v267_v44  ;;  %v272_v27 = vadd.s32 %v267_v44, %v248_v24  ;;  %v151_v44 = vsel %vm1032_vm8, 0, %v149_v35  ;;  %v822_v35 = vld [vmem:[%s1127_s2 + $0x10] sm:$0xff] }
  0x3e   :  { %v808_v9 = vadd.s32 4294967294, %v130_v0  ;;  %v274_v10 = vadd.s32 1, %v270_v3 }
  0x40   :  { %vm809_vm5 = vcmp.lt.s32.totalorder %v808_v9, 0  ;;  %v275_v11 = vsel %vm273_vm4, %v274_v10, %v270_v3  ;;  %v633_v3 = vadd.s32 3, %v151_v44  ;;  %vm167_vm4 = vweird.f32 %v891_v5 }
  0x41   :  { %v133_v12 = vsel %vm809_vm5, 0, %v808_v9  ;;  %v276_v15 = vadd.s32 %v275_v11, %v271_v7 }
  0x42   :  { %v134_v16 = vsub.s32 32, %v133_v12  ;;  %v135_v55 = vshll.u32 %v126_v56, %v133_v12  ;;  %v138_v17 = vsub.s32 4294967266, %v133_v12 }
  0x43   :  { %v277_v18 = vadd.s32 536870912, %v276_v15 }
  0x44   :  { %v136_v19 = vshrl.u32 %v118_v45, %v134_v16  ;;  %v139_v21 = vadd.s32 127, %v138_v17  ;;  %v634_v16 = vand.u32 3, %v633_v3 }
  0x45   :  { %v278_v22 = vshrl.u32 %v277_v18, 30  ;;  %v168_v18 = vand.u32 3, %v151_v44 }
  0x46   :  { %v137_v23 = vor.u32 %v136_v19, %v135_v55  ;;  %v140_v20 = vshll.u32 %v139_v21, 23  ;;  %vm636_vm12 = vcmp.eq.s32.totalorder %v634_v16, 0  ;;  %vm639_vm13 = vcmp.eq.s32.totalorder %v634_v16, 2 }
  0x47   :  { %v279_v38 = vshll.u32 %v278_v22, 30  ;;  %v302_v2 = vsub.s32 4, %v278_v22  ;;  %vm170_vm14 = vcmp.eq.s32.totalorder %v168_v18, 0  ;;  %vm173_vm15 = vcmp.eq.s32.totalorder %v168_v18, 2 }
  0x48   :  { %v141_v26 = vor.u32 4788187, %v140_v20  ;;  %v144_v28 = vcvt.s32.f32 %v137_v23  ;;  %vm635_vm0 = vcmp.lt.s32.totalorder %v634_v16, 2  ;;  %vm169_vm1 = vcmp.lt.s32.totalorder %v168_v18, 2 }
  0x49   :  { %v280_v29 = vsub.s32 %v276_v15, %v279_v38  ;;  %v303_v10 = vsel %vm180_vm10, %v302_v2, %v278_v22 }
  0x4a   :  { %v142_v30 = vand.u32 2147483647, %v141_v26  ;;  %v305_v11 = vsel %vm179_vm11, 0, %v303_v10 }
  0x4b   :  { %vm281_vm6 = vcmp.lt.s32.totalorder %v280_v29, 0  ;;  %v282_v58 = vsub.s32 0, %v280_v29  ;;  %v477_v23 = vadd.s32 3, %v305_v11 }
  0x4c   :  { %v145_v63 = vmul.f32 %v144_v28, %v142_v30 }
  0x4d   :  { %v283_v32 = vsel %vm281_vm6, %v282_v58, %v280_v29  ;;  %v478_v30 = vand.u32 3, %v477_v23 }
  0x4e   :  { %v146_v36 = vxor.u32 2147483648, %v145_v63  ;;  %v284_v39 = vclz %v283_v32 }
  0x4f   :  { %vm483_vm3 = vcmp.eq.s32.totalorder %v478_v30, 2 }
  0x50   :  { %v147_v40 = vsel %vm26_vm7, %v146_v36, %v145_v63  ;;  %v811_v31 = vadd.s32 4294967294, %v284_v39  ;;  %vm480_vm7 = vcmp.eq.s32.totalorder %v478_v30, 0 }
  0x51   :  { %v150_v41 = vsel %vm1032_vm8, %v891_v5, %v147_v40  ;;  %vm479_vm8 = vcmp.lt.s32.totalorder %v478_v30, 2 }
  0x52   :  { %v152_v43 = vmul.f32 %v150_v41, %v150_v41  ;;  %vm812_vm9 = vcmp.lt.s32.totalorder %v811_v31, 0 }
  0x53   :  { %v287_v49 = vsel %vm812_vm9, 0, %v811_v31  ;;  %vm321_vm9 = vweird.f32 %v889_v4 }
  0x54   :  { %v153_v37 = vmul.f32 -0.001358992, %v152_v43  ;;  %v160_v47 = vmul.f32 -0.00019511016, %v152_v43  ;;  %v288_v6 = vsub.s32 32, %v287_v49  ;;  %v289_v48 = vshll.u32 %v280_v29, %v287_v49 }
  0x55   :  { %v292_v42 = vsub.s32 4294967266, %v287_v49  ;;  %v322_v29 = vand.u32 3, %v305_v11 }
  0x56   :  { %v161_v50 = vadd.f32 0.008332121, %v160_v47  ;;  %v290_v51 = vshrl.u32 %v272_v27, %v288_v6  ;;  %v154_v52 = vadd.f32 0.041655596, %v153_v37  ;;  %v819_v27 = vld [vmem:[%s1126_s1 + $0x8] sm:$0xff]  ;;  %v649_v47 = vld [vmem:[%s1127_s2] sm:$0xff] }
  0x57   :  { %v293_v13 = vadd.s32 127, %v292_v42  ;;  %vm327_vm2 = vcmp.eq.s32.totalorder %v322_v29, 2  ;;  %vm323_vm5 = vcmp.lt.s32.totalorder %v322_v29, 2  ;;  %v821_v6 = vld [vmem:[%s1127_s2 + $0x8] sm:$0xff]  ;;  %vm324_vm6 = vcmp.eq.s32.totalorder %v322_v29, 0 }
  0x58   :  { %v162_v33 = vmul.f32 %v161_v50, %v152_v43  ;;  %v291_v53 = vor.u32 %v290_v51, %v289_v48  ;;  %v155_v14 = vmul.f32 %v154_v52, %v152_v43  ;;  %v654_v48 = vld [vmem:[%s1128_s3] sm:$0xff]  ;;  %v820_v51 = vld [vmem:[%s1126_s1 + $0x10] sm:$0xff] }
  0x59   :  { %v294_v56 = vshll.u32 %v293_v13, 23 }
  0x5a   :  { %v298_v59 = vcvt.s32.f32 %v291_v53  ;;  %v163_v25 = vadd.f32 -0.16666654, %v162_v33  ;;  %v156_v62 = vadd.f32 -0.4999988, %v155_v14  ;;  %v823_v53 = vld [vmem:[%s1128_s3 + $0x8] sm:$0xff] }
  0x5b   :  { %v295_v57 = vor.u32 4788187, %v294_v56  ;;  %v660_v56 = vsub.f32 %v821_v6, %v819_v27  ;;  %v666_v5 = vsub.f32 %v823_v53, %v821_v6 }
  0x5c   :  { %v164_v1 = vmul.f32 %v163_v25, %v152_v43  ;;  %v157_v7 = vmul.f32 %v156_v62, %v152_v43  ;;  %v644_v43 = vld [vmem:[%s1126_s1] sm:$0xff]  ;;  %v663_v62 = vsub.f32 %v823_v53, %v819_v27 }
  0x5d   :  { %v296_v60 = vand.u32 2147483647, %v295_v57  ;;  %v659_v54 = vsub.f32 %v649_v47, %v644_v43  ;;  %v662_v57 = vsub.f32 %v654_v48, %v644_v43 }
  0x5e   :  { %v165_v9 = vadd.f32 1.0, %v164_v1  ;;  %v158_v55 = vadd.f32 1.0, %v157_v7  ;;  %v665_v1 = vsub.f32 %v654_v48, %v649_v47 }
  0x5f   :  { %v299_v61 = vmul.f32 %v298_v59, %v296_v60 }
  0x60   :  { %v166_v17 = vmul.f32 %v165_v9, %v150_v41  ;;  %v174_v22 = vxor.u32 2147483648, %v158_v55  ;;  %v661_v9 = vsub.f32 %v822_v35, %v820_v51 }
  0x61   :  { %v300_v24 = vxor.u32 2147483648, %v299_v61 }
  0x62   :  { %v171_v38 = vxor.u32 2147483648, %v166_v17  ;;  %v641_v63 = vsel %vm639_vm13, %v174_v22, %v166_v17  ;;  %v175_v36 = vsel %vm173_vm15, %v174_v22, %v166_v17 }
  0x63   :  { %v301_v0 = vsel %vm180_vm10, %v300_v24, %v299_v61 }
  0x64   :  { %v304_v46 = vsel %vm179_vm11, %v889_v4, %v301_v0  ;;  %v638_v58 = vsel %vm636_vm12, %v158_v55, %v171_v38  ;;  %v172_v39 = vsel %vm170_vm14, %v158_v55, %v171_v38  ;;  %v824_v4 = vld [vmem:[%s1128_s3 + $0x10] sm:$0xff] }
  0x65   :  { %v306_v45 = vmul.f32 %v304_v46, %v304_v46  ;;  %v642_v41 = vsel %vm635_vm0, %v638_v58, %v641_v63  ;;  %v176_v42 = vsel %vm169_vm1, %v172_v39, %v175_v36  ;;  %v664_v10 = vsub.f32 %v824_v4, %v820_v51 }
  0x66   :  { %v643_v50 = vsel %vm167_vm4, nan, %v642_v41  ;;  %v177_v59 = vsel %vm167_vm4, nan, %v176_v42 }
  0x67   :  { %v307_v12 = vmul.f32 -0.001358992, %v306_v45  ;;  %v314_v15 = vmul.f32 -0.00019511016, %v306_v45  ;;  %v670_v60 = vsub.f32 %v643_v50, %v820_v51  ;;  %v673_v0 = vsub.f32 %v643_v50, %v822_v35 }
  0x69   :  { %v308_v19 = vadd.f32 0.041655596, %v307_v12  ;;  %v315_v21 = vadd.f32 0.008332121, %v314_v15  ;;  %v678_v11 = vmul.f32 %v670_v60, %v659_v54  ;;  %v700_v55 = vmul.f32 %v670_v60, %v663_v62 }
  0x6a   :  { %v704_v18 = vmul.f32 %v670_v60, %v662_v57 }
  0x6b   :  { %v309_v8 = vmul.f32 %v308_v19, %v306_v45  ;;  %v316_v20 = vmul.f32 %v315_v21, %v306_v45  ;;  %v726_v19 = vmul.f32 %v673_v0, %v666_v5  ;;  %v730_v21 = vmul.f32 %v673_v0, %v665_v1 }
  0x6d   :  { %v310_v26 = vadd.f32 -0.4999988, %v309_v8  ;;  %v317_v28 = vadd.f32 -0.16666654, %v316_v20 }
  0x6f   :  { %v311_v32 = vmul.f32 %v310_v26, %v306_v45  ;;  %v318_v34 = vmul.f32 %v317_v28, %v306_v45  ;;  %v674_v45 = vmul.f32 %v670_v60, %v660_v56 }
  0x71   :  { %v312_v40 = vadd.f32 1.0, %v311_v32  ;;  %v319_v31 = vadd.f32 1.0, %v318_v34 }
  0x73   :  { %v320_v49 = vmul.f32 %v319_v31, %v304_v46  ;;  %v328_v37 = vxor.u32 2147483648, %v312_v40  ;;  %v667_v46 = vsub.f32 %v824_v4, %v822_v35 }
  0x75   :  { %v325_v13 = vxor.u32 2147483648, %v320_v49  ;;  %v329_v52 = vsel %vm327_vm2, %v328_v37, %v320_v49  ;;  %v485_v33 = vsel %vm483_vm3, %v328_v37, %v320_v49 }
  0x77   :  { %v326_v14 = vsel %vm324_vm6, %v312_v40, %v325_v13  ;;  %v482_v25 = vsel %vm480_vm7, %v312_v40, %v325_v13 }
  0x78   :  { %v330_v61 = vsel %vm323_vm5, %v326_v14, %v329_v52  ;;  %v486_v44 = vsel %vm479_vm8, %v482_v25, %v485_v33 }
  0x79   :  { %v331_v2 = vsel %vm321_vm9, nan, %v330_v61  ;;  %v487_v24 = vsel %vm321_vm9, nan, %v486_v44 }
  0x7a   :  { %v332_v3 = vmul.f32 %v331_v2, %v177_v59  ;;  %v488_v7 = vmul.f32 %v487_v24, %v177_v59 }
  0x7c   :  { %v668_v12 = vsub.f32 %v332_v3, %v644_v43  ;;  %v669_v15 = vsub.f32 %v488_v7, %v819_v27  ;;  %v672_v16 = vsub.f32 %v488_v7, %v821_v6  ;;  %v671_v17 = vsub.f32 %v332_v3, %v649_v47 }
  0x7e   :  { %v675_v23 = vmul.f32 %v669_v15, %v661_v9  ;;  %v677_v8 = vmul.f32 %v668_v12, %v661_v9  ;;  %v680_v20 = vmul.f32 %v669_v15, %v659_v54  ;;  %v681_v38 = vmul.f32 %v668_v12, %v660_v56 }
  0x7f   :  { %v701_v22 = vmul.f32 %v669_v15, %v664_v10  ;;  %v703_v26 = vmul.f32 %v668_v12, %v664_v10  ;;  %v706_v28 = vmul.f32 %v669_v15, %v662_v57  ;;  %v707_v29 = vmul.f32 %v668_v12, %v663_v62 }
  0x80   :  { %v676_v30 = vsub.f32 %v674_v45, %v675_v23  ;;  %v679_v58 = vsub.f32 %v677_v8, %v678_v11  ;;  %v682_v63 = vsub.f32 %v680_v20, %v681_v38  ;;  %v727_v32 = vmul.f32 %v672_v16, %v667_v46 }
  0x81   :  { %v702_v34 = vsub.f32 %v700_v55, %v701_v22  ;;  %v705_v36 = vsub.f32 %v703_v26, %v704_v18  ;;  %v708_v39 = vsub.f32 %v706_v28, %v707_v29  ;;  %v729_v40 = vmul.f32 %v671_v17, %v667_v46 }
  0x82   :  { %v683_v31 = vmul.f32 %v676_v30, %v676_v30  ;;  %v684_v41 = vmul.f32 %v679_v58, %v679_v58  ;;  %v686_v43 = vmul.f32 %v682_v63, %v682_v63  ;;  %v728_v27 = vsub.f32 %v726_v19, %v727_v32  ;;  %v825_v58 = vld [vmem:[%s1126_s1 + $0x18] sm:$0xff] }
  0x83   :  { %v709_v49 = vmul.f32 %v702_v34, %v702_v34  ;;  %v710_v37 = vmul.f32 %v705_v36, %v705_v36  ;;  %v712_v47 = vmul.f32 %v708_v39, %v708_v39  ;;  %v731_v6 = vsub.f32 %v729_v40, %v730_v21  ;;  %v826_v63 = vld [vmem:[%s1127_s2 + $0x18] sm:$0xff]  ;;  %v828_v34 = vld [vmem:[%s1126_s1 + $0x20] sm:$0xff] }
  0x84   :  { %v685_v48 = vadd.f32 %v684_v41, %v683_v31  ;;  %v732_v42 = vmul.f32 %v672_v16, %v665_v1  ;;  %v733_v50 = vmul.f32 %v671_v17, %v666_v5  ;;  %v735_v51 = vmul.f32 %v728_v27, %v728_v27  ;;  %v827_v32 = vld [vmem:[%s1128_s3 + $0x18] sm:$0xff]  ;;  %v829_v36 = vld [vmem:[%s1127_s2 + $0x20] sm:$0xff]  ;;  %v833_v27 = vld [vmem:[%s1127_s2 + $0x28] sm:$0xff] }
  0x85   :  { %v711_v13 = vadd.f32 %v710_v37, %v709_v49  ;;  %v736_v52 = vmul.f32 %v731_v6, %v731_v6  ;;  %v830_v41 = vld [vmem:[%s1128_s3 + $0x20] sm:$0xff]  ;;  %v834_v49 = vld [vmem:[%s1128_s3 + $0x28] sm:$0xff] }
  0x86   :  { %v687_v33 = vadd.f32 %v686_v43, %v685_v48  ;;  %v734_v53 = vsub.f32 %v732_v42, %v733_v50  ;;  %v832_v43 = vld [vmem:[%s1126_s1 + $0x28] sm:$0xff] }
  0x87   :  { %v713_v54 = vadd.f32 %v712_v47, %v711_v13  ;;  %v737_v56 = vadd.f32 %v736_v52, %v735_v51 }
  0x88   :  { %843 = vrsqrt.f32 %v687_v33  ;;  %v738_v57 = vmul.f32 %v734_v53, %v734_v53  ;;  %vm695_vm10 = vcmp.eq.f32.partialorder %v687_v33, inf  ;;  %vm697_vm11 = vcmp.eq.f32.partialorder %v687_v33, 0.0 }
  0x89   :  { %845 = vrsqrt.f32 %v713_v54  ;;  %v698_v7 = vand.u32 2147483648, %v687_v33  ;;  %vm721_vm12 = vcmp.eq.f32.partialorder %v713_v54, inf  ;;  %v724_v46 = vand.u32 2147483648, %v713_v54 }
  0x8a   :  { %v739_v59 = vadd.f32 %v738_v57, %v737_v56  ;;  %vm723_vm13 = vcmp.eq.f32.partialorder %v713_v54, 0.0 }
  0x8c   :  { %847 = vrsqrt.f32 %v739_v59  ;;  %vm747_vm14 = vcmp.eq.f32.partialorder %v739_v59, inf  ;;  %v750_v19 = vand.u32 2147483648, %v739_v59  ;;  %vm749_vm15 = vcmp.eq.f32.partialorder %v739_v59, 0.0 }
  0x8e   :  { %v844_v14 = vpop.eup %843 }
  0x8f   :  { %v846_v25 = vpop.eup %845  ;;  %v689_v35 = vmul.f32 %v844_v14, %v687_v33 }
  0x90   :  { %v715_v60 = vmul.f32 %v846_v25, %v713_v54 }
  0x91   :  { %v690_v61 = vmul.f32 %v844_v14, %v689_v35 }
  0x92   :  { %v716_v44 = vmul.f32 %v846_v25, %v715_v60  ;;  %v848_v62 = vpop.eup %847 }
  0x93   :  { %v691_v4 = vmul.f32 0.5, %v690_v61  ;;  %v741_v24 = vmul.f32 %v848_v62, %v739_v59 }
  0x94   :  { %v717_v1 = vmul.f32 0.5, %v716_v44 }
  0x95   :  { %v692_v2 = vsub.f32 1.5, %v691_v4  ;;  %v742_v3 = vmul.f32 %v848_v62, %v741_v24 }
  0x96   :  { %v718_v5 = vsub.f32 1.5, %v717_v1 }
  0x97   :  { %v693_v0 = vmul.f32 %v844_v14, %v692_v2  ;;  %v743_v45 = vmul.f32 0.5, %v742_v3 }
  0x98   :  { %v719_v9 = vmul.f32 %v846_v25, %v718_v5 }
  0x99   :  { %v694_v10 = vmul.f32 %v693_v0, %v687_v33  ;;  %v744_v15 = vsub.f32 1.5, %v743_v45 }
  0x9a   :  { %v720_v11 = vmul.f32 %v719_v9, %v713_v54 }
  0x9b   :  { %v696_v12 = vsel %vm695_vm10, %v687_v33, %v694_v10  ;;  %v745_v18 = vmul.f32 %v848_v62, %v744_v15 }
  0x9c   :  { %v699_v16 = vsel %vm697_vm11, %v698_v7, %v696_v12  ;;  %v722_v55 = vsel %vm721_vm12, %v713_v54, %v720_v11 }
  0x9d   :  { %v725_v17 = vsel %vm723_vm13, %v724_v46, %v722_v55  ;;  %v746_v21 = vmul.f32 %v745_v18, %v739_v59 }
  0x9e   :  { %v752_v23 = vadd.f32 %v725_v17, %v699_v16 }
  0x9f   :  { %v748_v8 = vsel %vm747_vm14, %v739_v59, %v746_v21 }
  0xa0   :  { %v751_v20 = vsel %vm749_vm15, %v750_v19, %v748_v8 }
  0xa1   :  { %v753_v38 = vadd.f32 %v752_v23, %v751_v20 }
  0xa3   :  { %v754_v22 = vmax.f32 %v753_v38, 1e-12 }
  0xa5   :  { %849 = vrcp.f32 %v754_v22 }
  0xab   :  { %v850_v26 = vpop.eup %849 }
  0xac   :  { %v756_v28 = vmul.f32 %v850_v26, %v754_v22 }
  0xae   :  { %v757_v29 = vsub.f32 2.0, %v756_v28 }
  0xb0   :  { %v758_v30 = vmul.f32 %v850_v26, %v757_v29 }
  0xb2   :  { %v759_v39 = vmul.f32 %v758_v30, %v751_v20  ;;  %v760_v40 = vmul.f32 %v758_v30, %v725_v17  ;;  %v761_v31 = vmul.f32 %v758_v30, %v699_v16 }
  0xb4   :  { %v764_v37 = vmul.f32 %v825_v58, %v759_v39  ;;  %v767_v47 = vmul.f32 %v826_v63, %v760_v40  ;;  %v771_v6 = vmul.f32 %v827_v32, %v761_v31  ;;  %v776_v48 = vmul.f32 %v828_v34, %v759_v39 }
  0xb5   :  { %v779_v42 = vmul.f32 %v829_v36, %v760_v40  ;;  %v783_v50 = vmul.f32 %v830_v41, %v761_v31  ;;  %v789_v51 = vmul.f32 %v832_v43, %v759_v39  ;;  %v792_v13 = vmul.f32 %v833_v27, %v760_v40 }
  0xb6   :  { %v768_v52 = vadd.f32 %v767_v47, %v764_v37  ;;  %v796_v33 = vmul.f32 %v834_v49, %v761_v31 }
  0xb7   :  { %v780_v53 = vadd.f32 %v779_v42, %v776_v48  ;;  %v793_v54 = vadd.f32 %v792_v13, %v789_v51 }
  0xb8   :  { %v772_v56 = vadd.f32 %v771_v6, %v768_v52 }
  0xb9   :  { %v784_v57 = vadd.f32 %v783_v50, %v780_v53  ;;  %v797_v59 = vadd.f32 %v796_v33, %v793_v54 }
  0xba   :  { %773 = vst [vmem:[%s1129_s4] sm:$0xff] %v772_v56 }
  0xbb   :  { %831 = vst [vmem:[%s1129_s4 + $0x8] sm:$0xff] %v784_v57 }
  0xbc   :  { %835 = vst [vmem:[%s1129_s4 + $0x10] sm:$0xff] %v797_v59 }

</bundles_post_ra>
